<compile_context>
chip_gen: v5e
topology: v5e:2x2
jax: 0.10.0
libtpu: 0.0.40
codegen_flags: <defaults>
</compile_context>

<pallas_src>
import functools

import jax
import jax.numpy as jnp
from jax.experimental import pallas as pl
from jax.experimental.pallas import tpu as pltpu

NF = 16          # nf
N_LAYERS = 4     # n_layers
H_STEP = 0.05    # t_end / n_layers = (0.05 * 4) / 4
TB_MAX = 2048    # max batch tile (lanes); multiple of 128
BLK = 128        # lane-aligned column block width inside the packed parameter slab

# Column-block indices inside the packed (64, N_PARAM_BLOCKS*BLK) parameter slab.
C_EW1, C_EW2, C_EW3, C_DW1, C_DW2, C_DW3, C_BIAS = range(7)
C_KT0 = 7                 # K_j^T           at block C_KT0 + j
C_M0 = 7 + N_LAYERS       # h * (J @ K_j)   at block C_M0  + j
N_PARAM_BLOCKS = 7 + 2 * N_LAYERS


def _round_up(x, m):
    return ((int(x) + m - 1) // m) * m


def _auto_tile(n, max_tb=TB_MAX):
    """Pick a batch tile: big enough to amortize per-step + MXU drain overhead,
    small enough to avoid gross padding waste, and >= 2 grid steps when the batch
    spans >= 2 lane tiles (so both v7x TensorCores get work)."""
    n_al = _round_up(max(int(n), 1), 128)
    if n_al <= 128:
        return 128
    n_steps = max(2, -(-n_al // max_tb))
    return _round_up(-(-n_al // n_steps), 128)


def hnn_kernel(x_ref, p_ref, out_ref):
    f32 = jnp.float32
    X = x_ref[...]                                   # (3, TB) -- batch on lanes

    def wslice(blk, rows, cols):
        # static, lane-aligned slice of the packed parameter slab
        c = blk * BLK
        return p_ref[0:rows, c:c + cols]

    def bias_col(rows, c):
        c0 = C_BIAS * BLK + c
        return p_ref[0:rows, c0:c0 + 1]              # (rows, 1) column vector

    def mm(w, a):
        return jnp.dot(w, a, preferred_element_type=f32)

    # --- fused block-diagonal encoder (q-path rows on top, p-path rows below) ---
    a = jnp.tanh(mm(wslice(C_EW1, 64, 3), X) + bias_col(64, 0))     # (64, TB)
    a = jnp.tanh(mm(wslice(C_EW2, 32, 64), a) + bias_col(32, 1))    # (32, TB)
    y = jnp.tanh(mm(wslice(C_EW3, NF, 32), a) + bias_col(NF, 2))    # (NF, TB): 0..7=q, 8..15=p

    # --- H1 / J1 Hamiltonian block: y += h*(J@K_j) @ tanh(K_j^T @ y + b_j) ---
    for j in range(N_LAYERS):
        kt = wslice(C_KT0 + j, NF, NF)
        m = wslice(C_M0 + j, NF, NF)
        act = jnp.tanh(mm(kt, y) + bias_col(NF, 6 + j))
        y = y + mm(m, act)

    # --- decoder ---
    z = jnp.tanh(mm(wslice(C_DW1, 32, NF), y) + bias_col(32, 3))    # (32, TB)
    z = jnp.tanh(mm(wslice(C_DW2, 16, 32), z) + bias_col(16, 4))    # (16, TB)
    out_ref[...] = mm(wslice(C_DW3, 3, 16), z) + bias_col(3, 5)     # (3, TB), lane-dense store


@functools.partial(jax.jit, static_argnames=("tb",))
def strict_hnn_forward(x, params, tb=None):
    (qw1, qb1, qw2, qb2, qw3, qb3,
     pw1, pb1, pw2, pb2, pw3, pb3,
     K, bH,
     dw1, db1, dw2, db2, dw3, db3) = params

    f32 = jnp.float32
    nh = NF // 2
    n = x.shape[0]

    # --- batch tile selection (static under jit) ---
    tb = _auto_tile(n) if tb is None else _round_up(tb, 128)
    n_pad = pl.cdiv(n, tb) * tb

    # --- fused block-diagonal encoder weights (torch (out, in) layout) ---
    ew1 = jnp.zeros((64, 3), f32).at[:32, :2].set(qw1).at[32:, 2:].set(pw1)
    ew2 = jnp.zeros((32, 64), f32).at[:16, :32].set(qw2).at[16:, 32:].set(pw2)
    ew3 = jnp.zeros((NF, 32), f32).at[:nh, :16].set(qw3).at[nh:, 16:].set(pw3)

    # --- Hamiltonian constants: K^T and h*(J@K) folded at trace time ---
    eye = jnp.eye(nh, dtype=f32)
    zer = jnp.zeros((nh, nh), f32)
    J = jnp.block([[zer, eye], [-eye, zer]])
    KT = jnp.transpose(K, (0, 2, 1))                    # (L, nf, nf)
    M = H_STEP * jnp.einsum("ab,lbc->lac", J, K)        # (L, nf, nf) = h * (J @ K_j)

    # --- all biases packed into one (64, 6 + L) column buffer ---
    bias = jnp.zeros((64, 6 + N_LAYERS), f32)
    bias = bias.at[:64, 0].set(jnp.concatenate([qb1, pb1]))
    bias = bias.at[:32, 1].set(jnp.concatenate([qb2, pb2]))
    bias = bias.at[:NF, 2].set(jnp.concatenate([qb3, pb3]))
    bias = bias.at[:32, 3].set(db1)
    bias = bias.at[:16, 4].set(db2)
    bias = bias.at[:3, 5].set(db3)
    for j in range(N_LAYERS):
        bias = bias.at[:NF, 6 + j].set(bH[j])

    # --- single lane-aligned parameter slab: one constant input, one DMA ---
    P = jnp.zeros((64, N_PARAM_BLOCKS * BLK), f32)

    def put(slab, blk, arr):
        r, c = arr.shape
        return slab.at[:r, blk * BLK: blk * BLK + c].set(arr)

    P = put(P, C_EW1, ew1)
    P = put(P, C_EW2, ew2)
    P = put(P, C_EW3, ew3)
    P = put(P, C_DW1, dw1)
    P = put(P, C_DW2, dw2)
    P = put(P, C_DW3, dw3)
    P = put(P, C_BIAS, bias)
    for j in range(N_LAYERS):
        P = put(P, C_KT0 + j, KT[j])
        P = put(P, C_M0 + j, M[j])

    # --- feature-major input, zero-padded to a multiple of the batch tile ---
    xt = jnp.zeros((3, n_pad), f32).at[:, :n].set(x.T.astype(f32))

    # --- cost estimate (transcendental-heavy, not matmul-heavy) ---
    flops_per_row = 2 * (64 * 3 + 32 * 64 + NF * 32
                         + N_LAYERS * 2 * NF * NF
                         + 32 * NF + 16 * 32 + 3 * 16)
    transc_per_row = 64 + 32 + NF + N_LAYERS * NF + 32 + 16
    cost = pl.CostEstimate(
        flops=flops_per_row * n_pad,
        transcendentals=transc_per_row * n_pad,
        bytes_accessed=4 * 6 * n_pad + 4 * int(P.size),
    )

    out_t = pl.pallas_call(
        hnn_kernel,
        out_shape=jax.ShapeDtypeStruct((3, n_pad), f32),
        grid_spec=pltpu.PrefetchScalarGridSpec(
            num_scalar_prefetch=0,
            grid=(n_pad // tb,),
            in_specs=[
                pl.BlockSpec((3, tb), lambda i: (0, i)),               # x tile: batch on lanes
                pl.BlockSpec((64, N_PARAM_BLOCKS * BLK), lambda i: (0, 0)),  # constant slab
            ],
            out_specs=pl.BlockSpec((3, tb), lambda i: (0, i)),
        ),
        compiler_params=pltpu.CompilerParams(
            dimension_semantics=("parallel",),        # batch grid across TCs on v7x
            vmem_limit_bytes=32 * 1024 * 1024,        # v7x-safe explicit budget
        ),
        cost_estimate=cost,
    )(xt, P)

    return out_t[:, :n].T                             # (B, 3)


def init_params(key):
    """Deterministic synthetic parameters matching StrictHNN(nf=16, n_layers=4).

    Linear weights in PyTorch-native (out_features, in_features) layout; biases as
    (out_features,).  K is (n_layers, nf, nf) with K[j] == K_torch[:, :, j];
    bH is (n_layers, nf).
    """
    def linear(key, fan_in, fan_out):
        kw, kb = jax.random.split(key)
        bound = 1.0 / jnp.sqrt(jnp.float32(fan_in))
        w = jax.random.uniform(kw, (fan_out, fan_in), jnp.float32, -bound, bound)
        b = jax.random.uniform(kb, (fan_out,), jnp.float32, -bound, bound)
        return w, b

    keys = jax.random.split(key, 12)
    # encoder_q: Linear(2,32) Tanh Linear(32,16) Tanh Linear(16,8) Tanh
    qw1, qb1 = linear(keys[0], 2, 32)
    qw2, qb2 = linear(keys[1], 32, 16)
    qw3, qb3 = linear(keys[2], 16, NF // 2)
    # encoder_p: Linear(1,32) Tanh Linear(32,16) Tanh Linear(16,8) Tanh
    pw1, pb1 = linear(keys[3], 1, 32)
    pw2, pb2 = linear(keys[4], 32, 16)
    pw3, pb3 = linear(keys[5], 16, NF // 2)
    # H1 hamiltonian parameters
    K = jax.random.normal(keys[6], (N_LAYERS, NF, NF), jnp.float32)
    bH = jax.random.normal(keys[7], (N_LAYERS, NF), jnp.float32)
    # decoder: Linear(16,32) Tanh Linear(32,16) Tanh Linear(16,3)
    dw1, db1 = linear(keys[8], NF, 32)
    dw2, db2 = linear(keys[9], 32, 16)
    dw3, db3 = linear(keys[10], 16, 3)

    return (qw1, qb1, qw2, qb2, qw3, qb3,
            pw1, pb1, pw2, pb2, pw3, pb3,
            K, bH,
            dw1, db1, dw2, db2, dw3, db3)


def ref_forward(x, params):
    """Pure-JAX reference implementing the same PyTorch semantics (row-major)."""
    (qw1, qb1, qw2, qb2, qw3, qb3,
     pw1, pb1, pw2, pb2, pw3, pb3,
     K, bH,
     dw1, db1, dw2, db2, dw3, db3) = params
    q = jnp.tanh(x[:, :2] @ qw1.T + qb1)
    q = jnp.tanh(q @ qw2.T + qb2)
    q = jnp.tanh(q @ qw3.T + qb3)
    p = jnp.tanh(x[:, 2:] @ pw1.T + pb1)
    p = jnp.tanh(p @ pw2.T + pb2)
    p = jnp.tanh(p @ pw3.T + pb3)
    y = jnp.concatenate([q, p], axis=1)
    nh = NF // 2
    eye = jnp.eye(nh, dtype=jnp.float32)
    zer = jnp.zeros((nh, nh), jnp.float32)
    J = jnp.block([[zer, eye], [-eye, zer]])
    for j in range(N_LAYERS):
        y = y + H_STEP * jnp.tanh(y @ K[j] + bH[j]) @ (J @ K[j]).T
    z = jnp.tanh(y @ dw1.T + db1)
    z = jnp.tanh(z @ dw2.T + db2)
    return z @ dw3.T + db3


if __name__ == "__main__":
    key = jax.random.PRNGKey(0)
    k_param, k_x = jax.random.split(key)
    params = init_params(k_param)

    # Batch that is NOT a multiple of any tile, to exercise padding + the 2-step grid.
    B = 300
    x = jax.random.normal(k_x, (B, 3), jnp.float32)   # pendulum state: [q (2), p (1)]

    out = strict_hnn_forward(x, params)               # auto tile -> tb=256, grid=2
    out = jax.block_until_ready(out)

    ref = ref_forward(x, params)
    assert out.shape == (B, 3)
    assert jnp.allclose(out, ref, atol=1e-4, rtol=1e-4), "mismatch vs JAX reference"

    print("KERNEL_OK")
</pallas_src>

<mosaic_0001>
module attributes {stable_mosaic.version = 11 : i64} {
  func.func @hnn_kernel(%arg0: i32, %arg1: memref<3x256xf32, #tpu.memory_space<vmem>>, %arg2: memref<64x1920xf32, #tpu.memory_space<vmem>>, %arg3: memref<3x256xf32, #tpu.memory_space<vmem>>) attributes {dimension_semantics = [#tpu.dimension_semantics<parallel>], iteration_bounds = array<i64: 2>, scalar_prefetch = 0 : i64, scratch_operands = 0 : i64, tpu.core_type = #tpu.core_type<tc>, window_params = [{transform_indices = @transform_0, window_bounds = array<i64: 3, 256>}, {pipeline_mode = #tpu.pipeline_mode<synchronous>, transform_indices = @transform_1, window_bounds = array<i64: 64, 1920>}, {transform_indices = @transform_2, window_bounds = array<i64: 3, 256>}]} {
    %c0 = arith.constant 0 : index
    %c0_0 = arith.constant 0 : index
    %0 = vector.load %arg1[%c0, %c0_0] : memref<3x256xf32, #tpu.memory_space<vmem>>, vector<3x256xf32>
    %c0_1 = arith.constant 0 : index
    %c0_2 = arith.constant 0 : index
    %1 = vector.load %arg2[%c0_1, %c0_2] : memref<64x1920xf32, #tpu.memory_space<vmem>>, vector<64x3xf32>
    %cst = arith.constant dense<0.000000e+00> : vector<64x256xf32>
    %2 = tpu.matmul %1, %0, %cst {dimension_numbers = #tpu.dot_dimension_numbers<[1], [0], [0], [1], [0, 0, 1, 1], [], []>} : vector<64x3xf32>, vector<3x256xf32>, vector<64x256xf32> -> vector<64x256xf32>
    %c0_3 = arith.constant 0 : index
    %c768 = arith.constant 768 : index
    %3 = vector.load %arg2[%c0_3, %c768] : memref<64x1920xf32, #tpu.memory_space<vmem>>, vector<64x1xf32>
    %4 = vector.broadcast %3 : vector<64x1xf32> to vector<64x256xf32>
    %5 = arith.addf %2, %4 : vector<64x256xf32>
    %6 = math.tanh %5 : vector<64x256xf32>
    %c0_4 = arith.constant 0 : index
    %c128 = arith.constant 128 : index
    %7 = vector.load %arg2[%c0_4, %c128] : memref<64x1920xf32, #tpu.memory_space<vmem>>, vector<32x64xf32>
    %cst_5 = arith.constant dense<0.000000e+00> : vector<32x256xf32>
    %8 = tpu.matmul %7, %6, %cst_5 {dimension_numbers = #tpu.dot_dimension_numbers<[1], [0], [0], [1], [0, 0, 1, 1], [], []>} : vector<32x64xf32>, vector<64x256xf32>, vector<32x256xf32> -> vector<32x256xf32>
    %c0_6 = arith.constant 0 : index
    %c769 = arith.constant 769 : index
    %9 = vector.load %arg2[%c0_6, %c769] : memref<64x1920xf32, #tpu.memory_space<vmem>>, vector<32x1xf32>
    %10 = vector.broadcast %9 : vector<32x1xf32> to vector<32x256xf32>
    %11 = arith.addf %8, %10 : vector<32x256xf32>
    %12 = math.tanh %11 : vector<32x256xf32>
    %c0_7 = arith.constant 0 : index
    %c256 = arith.constant 256 : index
    %13 = vector.load %arg2[%c0_7, %c256] : memref<64x1920xf32, #tpu.memory_space<vmem>>, vector<16x32xf32>
    %cst_8 = arith.constant dense<0.000000e+00> : vector<16x256xf32>
    %14 = tpu.matmul %13, %12, %cst_8 {dimension_numbers = #tpu.dot_dimension_numbers<[1], [0], [0], [1], [0, 0, 1, 1], [], []>} : vector<16x32xf32>, vector<32x256xf32>, vector<16x256xf32> -> vector<16x256xf32>
    %c0_9 = arith.constant 0 : index
    %c770 = arith.constant 770 : index
    %15 = vector.load %arg2[%c0_9, %c770] : memref<64x1920xf32, #tpu.memory_space<vmem>>, vector<16x1xf32>
    %16 = vector.broadcast %15 : vector<16x1xf32> to vector<16x256xf32>
    %17 = arith.addf %14, %16 : vector<16x256xf32>
    %18 = math.tanh %17 : vector<16x256xf32>
    %c0_10 = arith.constant 0 : index
    %c896 = arith.constant 896 : index
    %19 = vector.load %arg2[%c0_10, %c896] : memref<64x1920xf32, #tpu.memory_space<vmem>>, vector<16x16xf32>
    %c0_11 = arith.constant 0 : index
    %c1408 = arith.constant 1408 : index
    %20 = vector.load %arg2[%c0_11, %c1408] : memref<64x1920xf32, #tpu.memory_space<vmem>>, vector<16x16xf32>
    %cst_12 = arith.constant dense<0.000000e+00> : vector<16x256xf32>
    %21 = tpu.matmul %19, %18, %cst_12 {dimension_numbers = #tpu.dot_dimension_numbers<[1], [0], [0], [1], [0, 0, 1, 1], [], []>} : vector<16x16xf32>, vector<16x256xf32>, vector<16x256xf32> -> vector<16x256xf32>
    %c0_13 = arith.constant 0 : index
    %c774 = arith.constant 774 : index
    %22 = vector.load %arg2[%c0_13, %c774] : memref<64x1920xf32, #tpu.memory_space<vmem>>, vector<16x1xf32>
    %23 = vector.broadcast %22 : vector<16x1xf32> to vector<16x256xf32>
    %24 = arith.addf %21, %23 : vector<16x256xf32>
    %25 = math.tanh %24 : vector<16x256xf32>
    %cst_14 = arith.constant dense<0.000000e+00> : vector<16x256xf32>
    %26 = tpu.matmul %20, %25, %cst_14 {dimension_numbers = #tpu.dot_dimension_numbers<[1], [0], [0], [1], [0, 0, 1, 1], [], []>} : vector<16x16xf32>, vector<16x256xf32>, vector<16x256xf32> -> vector<16x256xf32>
    %27 = arith.addf %18, %26 : vector<16x256xf32>
    %c0_15 = arith.constant 0 : index
    %c1024 = arith.constant 1024 : index
    %28 = vector.load %arg2[%c0_15, %c1024] : memref<64x1920xf32, #tpu.memory_space<vmem>>, vector<16x16xf32>
    %c0_16 = arith.constant 0 : index
    %c1536 = arith.constant 1536 : index
    %29 = vector.load %arg2[%c0_16, %c1536] : memref<64x1920xf32, #tpu.memory_space<vmem>>, vector<16x16xf32>
    %cst_17 = arith.constant dense<0.000000e+00> : vector<16x256xf32>
    %30 = tpu.matmul %28, %27, %cst_17 {dimension_numbers = #tpu.dot_dimension_numbers<[1], [0], [0], [1], [0, 0, 1, 1], [], []>} : vector<16x16xf32>, vector<16x256xf32>, vector<16x256xf32> -> vector<16x256xf32>
    %c0_18 = arith.constant 0 : index
    %c775 = arith.constant 775 : index
    %31 = vector.load %arg2[%c0_18, %c775] : memref<64x1920xf32, #tpu.memory_space<vmem>>, vector<16x1xf32>
    %32 = vector.broadcast %31 : vector<16x1xf32> to vector<16x256xf32>
    %33 = arith.addf %30, %32 : vector<16x256xf32>
    %34 = math.tanh %33 : vector<16x256xf32>
    %cst_19 = arith.constant dense<0.000000e+00> : vector<16x256xf32>
    %35 = tpu.matmul %29, %34, %cst_19 {dimension_numbers = #tpu.dot_dimension_numbers<[1], [0], [0], [1], [0, 0, 1, 1], [], []>} : vector<16x16xf32>, vector<16x256xf32>, vector<16x256xf32> -> vector<16x256xf32>
    %36 = arith.addf %27, %35 : vector<16x256xf32>
    %c0_20 = arith.constant 0 : index
    %c1152 = arith.constant 1152 : index
    %37 = vector.load %arg2[%c0_20, %c1152] : memref<64x1920xf32, #tpu.memory_space<vmem>>, vector<16x16xf32>
    %c0_21 = arith.constant 0 : index
    %c1664 = arith.constant 1664 : index
    %38 = vector.load %arg2[%c0_21, %c1664] : memref<64x1920xf32, #tpu.memory_space<vmem>>, vector<16x16xf32>
    %cst_22 = arith.constant dense<0.000000e+00> : vector<16x256xf32>
    %39 = tpu.matmul %37, %36, %cst_22 {dimension_numbers = #tpu.dot_dimension_numbers<[1], [0], [0], [1], [0, 0, 1, 1], [], []>} : vector<16x16xf32>, vector<16x256xf32>, vector<16x256xf32> -> vector<16x256xf32>
    %c0_23 = arith.constant 0 : index
    %c776 = arith.constant 776 : index
    %40 = vector.load %arg2[%c0_23, %c776] : memref<64x1920xf32, #tpu.memory_space<vmem>>, vector<16x1xf32>
    %41 = vector.broadcast %40 : vector<16x1xf32> to vector<16x256xf32>
    %42 = arith.addf %39, %41 : vector<16x256xf32>
    %43 = math.tanh %42 : vector<16x256xf32>
    %cst_24 = arith.constant dense<0.000000e+00> : vector<16x256xf32>
    %44 = tpu.matmul %38, %43, %cst_24 {dimension_numbers = #tpu.dot_dimension_numbers<[1], [0], [0], [1], [0, 0, 1, 1], [], []>} : vector<16x16xf32>, vector<16x256xf32>, vector<16x256xf32> -> vector<16x256xf32>
    %45 = arith.addf %36, %44 : vector<16x256xf32>
    %c0_25 = arith.constant 0 : index
    %c1280 = arith.constant 1280 : index
    %46 = vector.load %arg2[%c0_25, %c1280] : memref<64x1920xf32, #tpu.memory_space<vmem>>, vector<16x16xf32>
    %c0_26 = arith.constant 0 : index
    %c1792 = arith.constant 1792 : index
    %47 = vector.load %arg2[%c0_26, %c1792] : memref<64x1920xf32, #tpu.memory_space<vmem>>, vector<16x16xf32>
    %cst_27 = arith.constant dense<0.000000e+00> : vector<16x256xf32>
    %48 = tpu.matmul %46, %45, %cst_27 {dimension_numbers = #tpu.dot_dimension_numbers<[1], [0], [0], [1], [0, 0, 1, 1], [], []>} : vector<16x16xf32>, vector<16x256xf32>, vector<16x256xf32> -> vector<16x256xf32>
    %c0_28 = arith.constant 0 : index
    %c777 = arith.constant 777 : index
    %49 = vector.load %arg2[%c0_28, %c777] : memref<64x1920xf32, #tpu.memory_space<vmem>>, vector<16x1xf32>
    %50 = vector.broadcast %49 : vector<16x1xf32> to vector<16x256xf32>
    %51 = arith.addf %48, %50 : vector<16x256xf32>
    %52 = math.tanh %51 : vector<16x256xf32>
    %cst_29 = arith.constant dense<0.000000e+00> : vector<16x256xf32>
    %53 = tpu.matmul %47, %52, %cst_29 {dimension_numbers = #tpu.dot_dimension_numbers<[1], [0], [0], [1], [0, 0, 1, 1], [], []>} : vector<16x16xf32>, vector<16x256xf32>, vector<16x256xf32> -> vector<16x256xf32>
    %54 = arith.addf %45, %53 : vector<16x256xf32>
    %c0_30 = arith.constant 0 : index
    %c384 = arith.constant 384 : index
    %55 = vector.load %arg2[%c0_30, %c384] : memref<64x1920xf32, #tpu.memory_space<vmem>>, vector<32x16xf32>
    %cst_31 = arith.constant dense<0.000000e+00> : vector<32x256xf32>
    %56 = tpu.matmul %55, %54, %cst_31 {dimension_numbers = #tpu.dot_dimension_numbers<[1], [0], [0], [1], [0, 0, 1, 1], [], []>} : vector<32x16xf32>, vector<16x256xf32>, vector<32x256xf32> -> vector<32x256xf32>
    %c0_32 = arith.constant 0 : index
    %c771 = arith.constant 771 : index
    %57 = vector.load %arg2[%c0_32, %c771] : memref<64x1920xf32, #tpu.memory_space<vmem>>, vector<32x1xf32>
    %58 = vector.broadcast %57 : vector<32x1xf32> to vector<32x256xf32>
    %59 = arith.addf %56, %58 : vector<32x256xf32>
    %60 = math.tanh %59 : vector<32x256xf32>
    %c0_33 = arith.constant 0 : index
    %c512 = arith.constant 512 : index
    %61 = vector.load %arg2[%c0_33, %c512] : memref<64x1920xf32, #tpu.memory_space<vmem>>, vector<16x32xf32>
    %cst_34 = arith.constant dense<0.000000e+00> : vector<16x256xf32>
    %62 = tpu.matmul %61, %60, %cst_34 {dimension_numbers = #tpu.dot_dimension_numbers<[1], [0], [0], [1], [0, 0, 1, 1], [], []>} : vector<16x32xf32>, vector<32x256xf32>, vector<16x256xf32> -> vector<16x256xf32>
    %c0_35 = arith.constant 0 : index
    %c772 = arith.constant 772 : index
    %63 = vector.load %arg2[%c0_35, %c772] : memref<64x1920xf32, #tpu.memory_space<vmem>>, vector<16x1xf32>
    %64 = vector.broadcast %63 : vector<16x1xf32> to vector<16x256xf32>
    %65 = arith.addf %62, %64 : vector<16x256xf32>
    %66 = math.tanh %65 : vector<16x256xf32>
    %c0_36 = arith.constant 0 : index
    %c640 = arith.constant 640 : index
    %67 = vector.load %arg2[%c0_36, %c640] : memref<64x1920xf32, #tpu.memory_space<vmem>>, vector<3x16xf32>
    %cst_37 = arith.constant dense<0.000000e+00> : vector<3x256xf32>
    %68 = tpu.matmul %67, %66, %cst_37 {dimension_numbers = #tpu.dot_dimension_numbers<[1], [0], [0], [1], [0, 0, 1, 1], [], []>} : vector<3x16xf32>, vector<16x256xf32>, vector<3x256xf32> -> vector<3x256xf32>
    %c0_38 = arith.constant 0 : index
    %c773 = arith.constant 773 : index
    %69 = vector.load %arg2[%c0_38, %c773] : memref<64x1920xf32, #tpu.memory_space<vmem>>, vector<3x1xf32>
    %70 = vector.broadcast %69 : vector<3x1xf32> to vector<3x256xf32>
    %71 = arith.addf %68, %70 : vector<3x256xf32>
    %c0_39 = arith.constant 0 : index
    %c0_40 = arith.constant 0 : index
    %72 = vector.load %arg3[%c0_39, %c0_40] : memref<3x256xf32, #tpu.memory_space<vmem>>, vector<3x256xf32>
    tpu.vector_store %arg3[%c0_39, %c0_40], %71 {strides = array<i32>} : memref<3x256xf32, #tpu.memory_space<vmem>>, vector<3x256xf32>,
    return
  }
  func.func @transform_0(%arg0: i32) -> (i32, i32) {
    %c0_i32 = arith.constant 0 : i32
    %c0_i32_0 = arith.constant 0 : i32
    return %c0_i32, %arg0 : i32, i32
  }
  func.func @transform_1(%arg0: i32) -> (i32, i32) {
    %c0_i32 = arith.constant 0 : i32
    %c0_i32_0 = arith.constant 0 : i32
    %c0_i32_1 = arith.constant 0 : i32
    return %c0_i32, %c0_i32_0 : i32, i32
  }
  func.func @transform_2(%arg0: i32) -> (i32, i32) {
    %c0_i32 = arith.constant 0 : i32
    %c0_i32_0 = arith.constant 0 : i32
    return %c0_i32, %arg0 : i32, i32
  }
}

</mosaic_0001>

<bundles_post_ra>
// kernel: strict_hnn_forward.1
= control target key start
LH: loop header
LB: loop body
LE: loop exit
PB: predicated region body
PF: predicated region fallthrough
CT: control target
= control target key end

     0   :  { %s1561_s9 = smov 0   ;;  %s1832_s0 = inlined_call_operand.vmem [shape: f32[3,512], index: 0, kind: input, shape index: {}]   ;;  %s1833_s1 = inlined_call_operand.vmem [shape: f32[64,1920], index: 1, kind: input, shape index: {}]   ;;  %s1834_s2 = inlined_call_operand.vmem [shape: f32[3,512], index: 2, kind: output, shape index: {}]  }
   0x1 LB: > { %s1288_s10 = sadd.s32 4294967295, %s1534_s9   ;;  %p1292_p0 = scmp.ge.s32.totalorder %s1534_s9, 1  ;;  %s1534_s9 = sphi %s1561_s9, %s12_s9  }
   0x2   : > { %p113_p1 = scmp.lt.s32.totalorder %s1534_s9, 3 }
   0x4   : > { %p114_p2 = pnand %p1292_p0, %p113_p1 }
   0x5   : > { %s1293_s13 = sshll.u32 (!%p114_p2), %s1288_s10, 1 }
   0x6   : > { %117 = sbr.rel (%p114_p2) target bundleno = 2169 (0x879), region = 28  ;;  %p136_p3 = scmp.lt.s32.totalorder (!%p114_p2), %s1293_s13, 3 }
   0xb   : > { %v161_v0 = vld [vmem:[%s1833_s1 + $0x288] sm:$0xff]  ;;  %v1536_v1 = vmov 0   ;;  %v163_v2 = vld [vmem:[%s1833_s1 + $0x378] sm:$0xff]  ;;  %s1836_s13 = smov (!%p136_p3, %s1293_s13), 3  ;;  %v160_v4 = vld [vmem:[%s1833_s1 + $0x210] sm:$0xff]  ;;  %vm233_vm0 = vcmask 1042432  }
   0xc   : > { %1394 = vset.pattern.permute.xlu1 %v1536_v1  ;;  %1393 = vset.pattern.permute.xlu0 %v1536_v1  ;;  %s1294_s16 = sshll.u32 %s1836_s13, 2  ;;  %v162_v5 = vld [vmem:[%s1833_s1 + $0x300] sm:$0xff]  ;;  %vm208_vm1 = vcmask 23552   ;;  %v1595_v7 = vld [vmem:[%s1833_s1 + $0x30] sm:$0xff]  ;;  %v1600_v8 = vld [vmem:[%s1833_s1 + $0xa8] sm:$0xff]  ;;  %v1537_v60 = vmov 1  }
   0xd   : > { %191 = vperm.xlu1 %1394, %v161_v0   ;;  %201 = vperm.xlu0 %1393, %v163_v2   ;;  %s139_s19 = scalar_lea.vmem %s1832_s0, %s1294_s16  ;;  %v148_v6 = vld [vmem:[%s1833_s1] sm:$0xff]  ;;  %v149_v11 = vld [vmem:[%s1833_s1 + $0x78] sm:$0xff]  ;;  %v150_v13 = vld [vmem:[%s1833_s1 + $0xf0] sm:$0xff]  ;;  %vm364_vm2 = vcmask 523264   ;;  %vm457_vm3 = vcmask 261120   ;;  %vm526_vm4 = vcmask 130048   ;;  %s145_s7 = scalar_lea.vmem %s1834_s2, %s1294_s16 }
   0xe   : > { %1395 = vset.pattern.permute.xlu2 %v1536_v1  ;;  %v147_v3 = vld [vmem:[%s139_s19] sm:$0x77]  ;;  %v1614_v12 = vld [vmem:[%s1833_s1 + $0x198] sm:$0xff]  ;;  %v151_v15 = vld [vmem:[%s1833_s1 + $0x168] sm:$0xff]  ;;  %vm1228_vm5 = vcmask 1043456  }
   0xf   : > { %205 = vst [vmem:[#allocation1] ss:$2 sm:$0xff] %v147_v3  ;;  %181 = vperm.xlu2 %1395, %v1614_v12   ;;  %v1625_v14 = vld [vmem:[%s1833_s1 + $0x120] sm:$0xff]  ;;  %v153_v17 = vld [vmem:[%s1833_s1 + $0x258] sm:$0xff]  ;;  %v154_v18 = vld [vmem:[%s1833_s1 + $0x2d0] sm:$0xff] }
  0x10   : > { %v152_v16 = vld [vmem:[%s1833_s1 + $0x1e0] sm:$0xff]  ;;  %v155_v19 = vld [vmem:[%s1833_s1 + $0x348] sm:$0xff] }
  0x15   : > { %186 = vperm.xlu1 %1394, %v160_v4   ;;  %196 = vperm.xlu0 %1393, %v162_v5  }
  0x16   : > { %v206_v9 = vld.sshfl [vmem:[#allocation1] sm:$0xff pattern:$0x75316420]  ;;  %v207_v10 = vld.sshfl [vmem:[#allocation1 + $0x8] sm:$0xff pattern:$0x75316420] }
  0x17   : > { %1297 = vmatpush.msk.msra.mxu0 %vm233_vm0, %v206_v9  ;;  %1306 = vmatpush.msk.msra.mxu1 %vm233_vm0, %v207_v10 }
  0x18   : > { %1298 = vmatmul.msk.f32.vlgmr.msra.gmra.mxu0 %vm208_vm1, %v148_v6  ;;  %1307 = vmatmul.msk.f32.vlgmr.msra.gmra.mxu1 %vm208_vm1, %v148_v6 }
  0x19   : > { %176 = vperm.xlu2 %1395, %v1625_v14  }
  0x1d   : > { %166 = vperm.xlu1 %1394, %v1595_v7   ;;  %171 = vperm.xlu0 %1393, %v1600_v8  }
  0x20   : > { %1299 = vmatmul.msk.f32.gmra.mxu0 %vm208_vm1, %v149_v11  ;;  %1308 = vmatmul.msk.f32.gmra.mxu1 %vm208_vm1, %v149_v11 }
  0x21   : > { %1396 = vset.pattern.permute.xlu2 %v1537_v60 }
  0x22   : > { %361 = vperm.xlu2 %1396, %v1614_v12  }
  0x25   : > { %1398 = vset.pattern.permute.xlu1 %v1537_v60  ;;  %1397 = vset.pattern.permute.xlu0 %v1537_v60 }
  0x26   : > { %351 = vperm.xlu1 %1398, %v1600_v8   ;;  %356 = vperm.xlu0 %1397, %v1625_v14  }
  0x28   : > { %1300 = vmatmul.msk.f32.gmra.mxu0 %vm208_vm1, %v150_v13  ;;  %1309 = vmatmul.msk.f32.gmra.mxu1 %vm208_vm1, %v150_v13 }
  0x2a   : > { %346 = vperm.xlu2 %1396, %v1595_v7  }
  0x30   : > { %1301 = vmatmul.msk.f32.gmra.mxu0 %vm208_vm1, %v151_v15  ;;  %1310 = vmatmul.msk.f32.gmra.mxu1 %vm208_vm1, %v151_v15  ;;  %v336_v15 = vld [vmem:[%s1833_s1 + $0x8] sm:$0xff] }
  0x38   : > { %1302 = vmatmul.msk.f32.gmra.mxu0 %vm208_vm1, %v152_v16  ;;  %1311 = vmatmul.msk.f32.gmra.mxu1 %vm208_vm1, %v152_v16 }
  0x40   : > { %1303 = vmatmul.msk.f32.gmra.mxu0 %vm208_vm1, %v153_v17  ;;  %1312 = vmatmul.msk.f32.gmra.mxu1 %vm208_vm1, %v153_v17 }
  0x48   : > { %1304 = vmatmul.msk.f32.gmra.mxu0 %vm208_vm1, %v154_v18  ;;  %1313 = vmatmul.msk.f32.gmra.mxu1 %vm208_vm1, %v154_v18  ;;  %v337_v18 = vld [vmem:[%s1833_s1 + $0x80] sm:$0xff] }
  0x50   : > { %1305 = vmatmul.msk.f32.gmra.mxu0 %vm208_vm1, %v155_v19  ;;  %1314 = vmatmul.msk.f32.gmra.mxu1 %vm208_vm1, %v155_v19  ;;  %v338_v19 = vld [vmem:[%s1833_s1 + $0xf8] sm:$0xff] }
  0x69   : > { %v182_v36 = vpop.permute.xlu2 %181 }
  0x73   : > { %v177_v49 = vpop.permute.xlu2 %176 }
  0x7f   : > { %v202_v32 = vpop.permute.xlu0 %201  ;;  %v192_v33 = vpop.permute.xlu1 %191 }
  0x87   : > { %v197_v37 = vpop.permute.xlu0 %196  ;;  %v187_v40 = vpop.permute.xlu1 %186 }
  0x8f   : > { %v172_v53 = vpop.permute.xlu0 %171  ;;  %v167_v58 = vpop.permute.xlu1 %166 }
  0x95   : > { %v255_v20 = vpop.f32.mrf.mxu0  ;;  %v1653_v21 = vpop.f32.mrf.mxu1 }
  0x96   : > { %v256_v0 = vadd.f32 %v255_v20, %v167_v58  ;;  %v297_v2 = vadd.f32 %v1653_v21, %v167_v58  ;;  %v339_v20 = vld [vmem:[%s1833_s1 + $0x170] sm:$0xff] }
  0x9d   : > { %v258_v22 = vpop.f32.mrf.mxu0  ;;  %v299_v23 = vpop.f32.mrf.mxu1 }
  0x9e   : > { %v259_v59 = vadd.f32 %v258_v22, %v172_v53  ;;  %v300_v62 = vadd.f32 %v299_v23, %v172_v53 }
  0xa5   : > { %v261_v24 = vpop.f32.mrf.mxu0  ;;  %v302_v25 = vpop.f32.mrf.mxu1 }
  0xa6   : > { %v262_v54 = vadd.f32 %v261_v24, %v177_v49  ;;  %v303_v56 = vadd.f32 %v302_v25, %v177_v49 }
  0xad   : > { %v264_v26 = vpop.f32.mrf.mxu0  ;;  %v305_v27 = vpop.f32.mrf.mxu1 }
  0xae   : > { %v265_v50 = vadd.f32 %v264_v26, %v182_v36  ;;  %v306_v51 = vadd.f32 %v305_v27, %v182_v36  ;;  %v362_v26 = vpop.permute.xlu2 %361 }
  0xb5   : > { %v267_v28 = vpop.f32.mrf.mxu0  ;;  %v308_v29 = vpop.f32.mrf.mxu1 }
  0xb6   : > { %v268_v47 = vadd.f32 %v267_v28, %v187_v40  ;;  %v309_v48 = vadd.f32 %v308_v29, %v187_v40  ;;  %v1538_v28 = vmov 2   ;;  %v357_v29 = vpop.permute.xlu0 %356 }
  0xb7   : > { %1399 = vset.pattern.permute.xlu1 %v1538_v28  ;;  %1400 = vset.pattern.permute.xlu2 %v1538_v28 }
  0xb8   : > { %454 = vperm.xlu1 %1399, %v1600_v8   ;;  %449 = vperm.xlu2 %1400, %v1595_v7  }
  0xbd   : > { %v270_v30 = vpop.f32.mrf.mxu0  ;;  %v311_v31 = vpop.f32.mrf.mxu1 }
  0xbe   : > { %v271_v45 = vadd.f32 %v270_v30, %v192_v33  ;;  %v312_v46 = vadd.f32 %v311_v31, %v192_v33  ;;  %v352_v31 = vpop.permute.xlu1 %351 }
  0xc5   : > { %v273_v34 = vpop.f32.mrf.mxu0  ;;  %v314_v35 = vpop.f32.mrf.mxu1 }
  0xc6   : > { %v274_v41 = vadd.f32 %v273_v34, %v197_v37  ;;  %v315_v44 = vadd.f32 %v314_v35, %v197_v37  ;;  %v347_v37 = vpop.permute.xlu2 %346 }
  0xcd   : > { %v276_v38 = vpop.f32.mrf.mxu0  ;;  %v317_v39 = vpop.f32.mrf.mxu1 }
  0xce   : > { %v277_v42 = vadd.f32 %v276_v38, %v202_v32  ;;  %v318_v43 = vadd.f32 %v317_v39, %v202_v32 }
  0xd0   : > { %1416 = vtanh.f32 %v277_v42 }
  0xd1   : > { %1418 = vtanh.f32 %v318_v43 }
  0xd2   : > { %1420 = vtanh.f32 %v274_v41 }
  0xd3   : > { %1422 = vtanh.f32 %v315_v44 }
  0xd4   : > { %1424 = vtanh.f32 %v271_v45 }
  0xd5   : > { %1426 = vtanh.f32 %v312_v46 }
  0xd6   : > { %v1417_v52 = vpop.eup %1416  ;;  %1428 = vtanh.f32 %v268_v47 }
  0xd7   : > { %v1419_v55 = vpop.eup %1418  ;;  %1430 = vtanh.f32 %v309_v48  ;;  %385 = vmatpush.msra.mxu2 %v1417_v52  ;;  %v443_v48 = vld [vmem:[%s1833_s1 + $0x10] sm:$0xff]  ;;  %v1539_v52 = vmov 6  }
  0xd8   : > { %v1421_v57 = vpop.eup %1420  ;;  %1432 = vtanh.f32 %v265_v50  ;;  %414 = vmatpush.msra.mxu3 %v1419_v55  ;;  %1402 = vset.pattern.permute.xlu1 %v1539_v52 }
  0xd9   : > { %v1423_v61 = vpop.eup %1422  ;;  %1434 = vtanh.f32 %v306_v51  ;;  %386 = vmatpush.msra.mxu2 %v1421_v57  ;;  %v444_v51 = vld [vmem:[%s1833_s1 + $0x88] sm:$0xff]  ;;  %1401 = vset.pattern.permute.xlu0 %v1539_v52  ;;  %v1541_v52 = vmov 8  }
  0xda   : > { %v1425_v63 = vpop.eup %1424  ;;  %1436 = vtanh.f32 %v262_v54  ;;  %415 = vmatpush.msra.mxu3 %v1423_v61  ;;  %519 = vperm.xlu1 %1402, %v1595_v7  }
  0xdb   : > { %v1427_v1 = vpop.eup %1426  ;;  %1438 = vtanh.f32 %v303_v56  ;;  %387 = vmatpush.msra.mxu2 %v1425_v63  ;;  %523 = vperm.xlu0 %1401, %v1600_v8  }
  0xdc   : > { %v1429_v3 = vpop.eup %1428  ;;  %1440 = vtanh.f32 %v259_v59  ;;  %416 = vmatpush.msra.mxu3 %v1427_v1  ;;  %v514_v1 = vld [vmem:[%s1833_s1 + $0x38] sm:$0xff] }
  0xdd   : > { %v1431_v4 = vpop.eup %1430  ;;  %1442 = vtanh.f32 %v300_v62  ;;  %388 = vmatpush.msra.mxu2 %v1429_v3 }
  0xde   : > { %v1433_v5 = vpop.eup %1432  ;;  %1444 = vtanh.f32 %v256_v0  ;;  %417 = vmatpush.msra.mxu3 %v1431_v4  ;;  %v515_v4 = vld [vmem:[%s1833_s1 + $0xb0] sm:$0xff] }
  0xdf   : > { %v1435_v6 = vpop.eup %1434  ;;  %1446 = vtanh.f32 %v297_v2  ;;  %389 = vmatpush.msra.mxu2 %v1433_v5 }
  0xe0   : > { %v1437_v9 = vpop.eup %1436  ;;  %418 = vmatpush.msra.mxu3 %v1435_v6 }
  0xe1   : > { %v1439_v10 = vpop.eup %1438  ;;  %390 = vmatpush.msra.mxu2 %v1437_v9 }
  0xe2   : > { %v1441_v11 = vpop.eup %1440  ;;  %419 = vmatpush.msra.mxu3 %v1439_v10 }
  0xe3   : > { %v1443_v13 = vpop.eup %1442  ;;  %391 = vmatpush.msra.mxu2 %v1441_v11  ;;  %1406 = vset.pattern.permute.xlu0 %v1541_v52 }
  0xe4   : > { %v1445_v16 = vpop.eup %1444  ;;  %420 = vmatpush.msra.mxu3 %v1443_v13  ;;  %768 = vperm.xlu0 %1406, %v1595_v7  }
  0xe5   : > { %v1447_v17 = vpop.eup %1446  ;;  %392 = vmatpush.msra.mxu2 %v1445_v16 }
  0xe6   : > { %421 = vmatpush.msra.mxu3 %v1447_v17  ;;  %1315 = vmatmul.msk.f32.vlgmr.msra.gmra.mxu2 %vm364_vm2, %v336_v15 }
  0xe7   : > { %1319 = vmatmul.msk.f32.vlgmr.msra.gmra.mxu3 %vm364_vm2, %v336_v15 }
  0xee   : > { %1316 = vmatmul.msk.f32.gmra.mxu2 %vm364_vm2, %v337_v18 }
  0xef   : > { %1320 = vmatmul.msk.f32.gmra.mxu3 %vm364_vm2, %v337_v18 }
  0xf6   : > { %1317 = vmatmul.msk.f32.gmra.mxu2 %vm364_vm2, %v338_v19 }
  0xf7   : > { %1321 = vmatmul.msk.f32.gmra.mxu3 %vm364_vm2, %v338_v19 }
  0xfe   : > { %1318 = vmatmul.msk.f32.gmra.mxu2 %vm364_vm2, %v339_v20 }
  0xff   : > { %1322 = vmatmul.msk.f32.gmra.mxu3 %vm364_vm2, %v339_v20 }
 0x112   : > { %v450_v56 = vpop.permute.xlu2 %449 }
 0x12a   : > { %v455_v55 = vpop.permute.xlu1 %454 }
 0x14c   : > { %v520_v10 = vpop.permute.xlu1 %519 }
 0x14d   : > { %v524_v9 = vpop.permute.xlu0 %523 }
 0x169   : > { %v394_v21 = vpop.f32.mrf.mxu2 }
 0x16a   : > { %v423_v22 = vpop.f32.mrf.mxu3  ;;  %v395_v40 = vadd.f32 %v394_v21, %v347_v37  ;;  %v516_v21 = vld [vmem:[%s1833_s1 + $0x58] sm:$0xff] }
 0x16b   : > { %v424_v41 = vadd.f32 %v423_v22, %v347_v37 }
 0x171   : > { %v397_v23 = vpop.f32.mrf.mxu2 }
 0x172   : > { %v426_v24 = vpop.f32.mrf.mxu3  ;;  %v398_v38 = vadd.f32 %v397_v23, %v352_v31 }
 0x173   : > { %v427_v39 = vadd.f32 %v426_v24, %v352_v31  ;;  %v517_v24 = vld [vmem:[%s1833_s1 + $0xd0] sm:$0xff] }
 0x179   : > { %v400_v25 = vpop.f32.mrf.mxu2 }
 0x17a   : > { %v429_v27 = vpop.f32.mrf.mxu3  ;;  %v401_v32 = vadd.f32 %v400_v25, %v357_v29  ;;  %v1540_v25 = vmov 7  }
 0x17b   : > { %v430_v35 = vadd.f32 %v429_v27, %v357_v29  ;;  %1404 = vset.pattern.permute.xlu1 %v1540_v25  ;;  %1403 = vset.pattern.permute.xlu2 %v1540_v25 }
 0x17c   : > { %644 = vperm.xlu1 %1404, %v1595_v7   ;;  %648 = vperm.xlu2 %1403, %v1600_v8  }
 0x181   : > { %v403_v30 = vpop.f32.mrf.mxu2 }
 0x182   : > { %v404_v33 = vadd.f32 %v403_v30, %v362_v26  ;;  %v432_v34 = vpop.f32.mrf.mxu3 }
 0x183   : > { %v433_v36 = vadd.f32 %v432_v34, %v362_v26 }
 0x184   : > { %1448 = vtanh.f32 %v404_v33  ;;  %v639_v33 = vld [vmem:[%s1833_s1 + $0x40] sm:$0xff]  ;;  %1405 = vset.pattern.permute.xlu2 %v1541_v52 }
 0x185   : > { %1450 = vtanh.f32 %v433_v36  ;;  %772 = vperm.xlu2 %1405, %v1600_v8  }
 0x186   : > { %1452 = vtanh.f32 %v401_v32 }
 0x187   : > { %1454 = vtanh.f32 %v430_v35  ;;  %v640_v35 = vld [vmem:[%s1833_s1 + $0xb8] sm:$0xff] }
 0x188   : > { %1456 = vtanh.f32 %v398_v38 }
 0x189   : > { %1458 = vtanh.f32 %v427_v39 }
 0x18a   : > { %v1449_v42 = vpop.eup %1448  ;;  %1460 = vtanh.f32 %v395_v40 }
 0x18b   : > { %v1451_v43 = vpop.eup %1450  ;;  %1462 = vtanh.f32 %v424_v41  ;;  %476 = vmatpush.msrb.mxu2 %v1449_v42 }
 0x18c   : > { %v1453_v44 = vpop.eup %1452  ;;  %499 = vmatpush.msrb.mxu3 %v1451_v43 }
 0x18d   : > { %v1455_v45 = vpop.eup %1454  ;;  %477 = vmatpush.msrb.mxu2 %v1453_v44 }
 0x18e   : > { %v1457_v46 = vpop.eup %1456  ;;  %500 = vmatpush.msrb.mxu3 %v1455_v45 }
 0x18f   : > { %v1459_v47 = vpop.eup %1458  ;;  %478 = vmatpush.msrb.mxu2 %v1457_v46 }
 0x190   : > { %v1461_v49 = vpop.eup %1460  ;;  %501 = vmatpush.msrb.mxu3 %v1459_v47 }
 0x191   : > { %v1463_v50 = vpop.eup %1462  ;;  %479 = vmatpush.msrb.mxu2 %v1461_v49 }
 0x192   : > { %502 = vmatpush.msrb.mxu3 %v1463_v50  ;;  %1323 = vmatmul.msk.f32.vlgmr.msrb.gmra.mxu2 %vm457_vm3, %v443_v48 }
 0x193   : > { %1325 = vmatmul.msk.f32.vlgmr.msrb.gmra.mxu3 %vm457_vm3, %v443_v48  ;;  %v641_v48 = vld [vmem:[%s1833_s1 + $0x60] sm:$0xff] }
 0x19a   : > { %1324 = vmatmul.msk.f32.gmra.mxu2 %vm457_vm3, %v444_v51 }
 0x19b   : > { %1326 = vmatmul.msk.f32.gmra.mxu3 %vm457_vm3, %v444_v51  ;;  %v642_v51 = vld [vmem:[%s1833_s1 + $0xd8] sm:$0xff] }
 0x1d6   : > { %v649_v38 = vpop.permute.xlu2 %648 }
 0x1ee   : > { %v645_v39 = vpop.permute.xlu1 %644 }
 0x215   : > { %v481_v53 = vpop.f32.mrf.mxu2 }
 0x216   : > { %v504_v54 = vpop.f32.mrf.mxu3  ;;  %v482_v58 = vadd.f32 %v481_v53, %v450_v56 }
 0x217   : > { %v505_v61 = vadd.f32 %v504_v54, %v450_v56 }
 0x21d   : > { %v484_v57 = vpop.f32.mrf.mxu2 }
 0x21e   : > { %v485_v59 = vadd.f32 %v484_v57, %v455_v55  ;;  %v507_v60 = vpop.f32.mrf.mxu3 }
 0x21f   : > { %v508_v62 = vadd.f32 %v507_v60, %v455_v55  ;;  %v763_v60 = vld [vmem:[%s1833_s1 + $0x48] sm:$0xff] }
 0x220   : > { %1464 = vtanh.f32 %v485_v59 }
 0x221   : > { %1466 = vtanh.f32 %v508_v62  ;;  %v764_v62 = vld [vmem:[%s1833_s1 + $0xc0] sm:$0xff] }
 0x222   : > { %1468 = vtanh.f32 %v482_v58 }
 0x223   : > { %1470 = vtanh.f32 %v505_v61 }
 0x226   : > { %v1465_v63 = vpop.eup %1464 }
 0x227   : > { %v1467_v0 = vpop.eup %1466  ;;  %547 = vmatpush.msra.mxu2 %v1465_v63 }
 0x228   : > { %v1469_v2 = vpop.eup %1468  ;;  %570 = vmatpush.msra.mxu3 %v1467_v0 }
 0x229   : > { %v1471_v3 = vpop.eup %1470  ;;  %548 = vmatpush.msra.mxu2 %v1469_v2 }
 0x22a   : > { %571 = vmatpush.msra.mxu3 %v1471_v3  ;;  %1327 = vmatmul.msk.f32.vlgmr.msra.gmra.mxu2 %vm526_vm4, %v514_v1 }
 0x22b   : > { %1329 = vmatmul.msk.f32.vlgmr.msra.gmra.mxu3 %vm526_vm4, %v514_v1  ;;  %v773_v1 = vpop.permute.xlu2 %772 }
 0x232   : > { %1328 = vmatmul.msk.f32.gmra.mxu2 %vm526_vm4, %v515_v4 }
 0x233   : > { %1330 = vmatmul.msk.f32.gmra.mxu3 %vm526_vm4, %v515_v4 }
 0x2ad   : > { %v550_v5 = vpop.f32.mrf.mxu2 }
 0x2ae   : > { %v573_v6 = vpop.f32.mrf.mxu3  ;;  %v551_v13 = vadd.f32 %v550_v5, %v520_v10 }
 0x2af   : > { %v574_v17 = vadd.f32 %v573_v6, %v520_v10 }
 0x2b5   : > { %v553_v11 = vpop.f32.mrf.mxu2 }
 0x2b6   : > { %v554_v15 = vadd.f32 %v553_v11, %v524_v9  ;;  %v576_v16 = vpop.f32.mrf.mxu3 }
 0x2b7   : > { %v577_v18 = vadd.f32 %v576_v16, %v524_v9 }
 0x2b8   : > { %1472 = vtanh.f32 %v554_v15  ;;  %v765_v15 = vld [vmem:[%s1833_s1 + $0x68] sm:$0xff] }
 0x2b9   : > { %1474 = vtanh.f32 %v577_v18  ;;  %v766_v18 = vld [vmem:[%s1833_s1 + $0xe0] sm:$0xff] }
 0x2ba   : > { %1476 = vtanh.f32 %v551_v13 }
 0x2bb   : > { %1478 = vtanh.f32 %v574_v17 }
 0x2be   : > { %v1473_v19 = vpop.eup %1472 }
 0x2bf   : > { %v1475_v20 = vpop.eup %1474  ;;  %603 = vmatpush.msrb.mxu0 %v1473_v19  ;;  %v1542_v19 = vmov 9  }
 0x2c0   : > { %v1477_v22 = vpop.eup %1476  ;;  %626 = vmatpush.msrb.mxu1 %v1475_v20  ;;  %1407 = vset.pattern.permute.xlu1 %v1542_v19 }
 0x2c1   : > { %v1479_v23 = vpop.eup %1478  ;;  %604 = vmatpush.msrb.mxu0 %v1477_v22  ;;  %1408 = vset.pattern.permute.xlu2 %v1542_v19 }
 0x2c2   : > { %627 = vmatpush.msrb.mxu1 %v1479_v23  ;;  %1331 = vmatmul.msk.f32.vlgmr.msrb.gmra.mxu0 %vm526_vm4, %v516_v21 }
 0x2c3   : > { %1333 = vmatmul.msk.f32.vlgmr.msrb.gmra.mxu1 %vm526_vm4, %v516_v21  ;;  %896 = vperm.xlu1 %1407, %v1600_v8  }
 0x2c4   : > { %892 = vperm.xlu2 %1408, %v1595_v7  }
 0x2ca   : > { %1332 = vmatmul.msk.f32.gmra.mxu0 %vm526_vm4, %v517_v24 }
 0x2cb   : > { %1334 = vmatmul.msk.f32.gmra.mxu1 %vm526_vm4, %v517_v24 }
 0x33f   : > { %v606_v26 = vpop.f32.mrf.mxu0 }
 0x340   : > { %v629_v27 = vpop.f32.mrf.mxu1  ;;  %v635_v32 = vadd.f32 %v1469_v2, %v606_v26  ;;  %v769_v2 = vpop.permute.xlu0 %768 }
 0x341   : > { %v636_v34 = vadd.f32 %v1471_v3, %v629_v27  ;;  %v887_v27 = vld [vmem:[%s1833_s1 + $0x50] sm:$0xff] }
 0x347   : > { %v609_v28 = vpop.f32.mrf.mxu0 }
 0x348   : > { %v637_v29 = vadd.f32 %v1465_v63, %v609_v28  ;;  %v632_v30 = vpop.f32.mrf.mxu1 }
 0x349   : > { %v638_v31 = vadd.f32 %v1467_v0, %v632_v30 }
 0x34a   : > { %671 = vmatpush.msrb.mxu2 %v637_v29 }
 0x34b   : > { %694 = vmatpush.msrb.mxu3 %v638_v31 }
 0x34c   : > { %672 = vmatpush.msrb.mxu2 %v635_v32 }
 0x34d   : > { %695 = vmatpush.msrb.mxu3 %v636_v34  ;;  %1335 = vmatmul.msk.f32.vlgmr.msrb.gmra.mxu2 %vm526_vm4, %v639_v33 }
 0x34e   : > { %1337 = vmatmul.msk.f32.vlgmr.msrb.gmra.mxu3 %vm526_vm4, %v639_v33  ;;  %v893_v33 = vpop.permute.xlu2 %892 }
 0x355   : > { %1336 = vmatmul.msk.f32.gmra.mxu2 %vm526_vm4, %v640_v35 }
 0x356   : > { %1338 = vmatmul.msk.f32.gmra.mxu3 %vm526_vm4, %v640_v35 }
 0x3d0   : > { %v674_v36 = vpop.f32.mrf.mxu2 }
 0x3d1   : > { %v697_v37 = vpop.f32.mrf.mxu3  ;;  %v675_v43 = vadd.f32 %v674_v36, %v645_v39 }
 0x3d2   : > { %v698_v45 = vadd.f32 %v697_v37, %v645_v39 }
 0x3d8   : > { %v677_v40 = vpop.f32.mrf.mxu2 }
 0x3d9   : > { %v678_v41 = vadd.f32 %v677_v40, %v649_v38  ;;  %v700_v42 = vpop.f32.mrf.mxu3 }
 0x3da   : > { %v701_v44 = vadd.f32 %v700_v42, %v649_v38  ;;  %v889_v42 = vld [vmem:[%s1833_s1 + $0x70] sm:$0xff] }
 0x3db   : > { %1480 = vtanh.f32 %v678_v41 }
 0x3dc   : > { %1482 = vtanh.f32 %v701_v44 }
 0x3dd   : > { %1484 = vtanh.f32 %v675_v43 }
 0x3de   : > { %1486 = vtanh.f32 %v698_v45  ;;  %v890_v45 = vld [vmem:[%s1833_s1 + $0xe8] sm:$0xff] }
 0x3e1   : > { %v1481_v46 = vpop.eup %1480 }
 0x3e2   : > { %v1483_v47 = vpop.eup %1482  ;;  %727 = vmatpush.msra.mxu0 %v1481_v46  ;;  %v1543_v46 = vmov 3  }
 0x3e3   : > { %v1485_v49 = vpop.eup %1484  ;;  %750 = vmatpush.msra.mxu1 %v1483_v47  ;;  %1409 = vset.pattern.permute.xlu1 %v1543_v46 }
 0x3e4   : > { %v1487_v50 = vpop.eup %1486  ;;  %728 = vmatpush.msra.mxu0 %v1485_v49  ;;  %1411 = vset.pattern.permute.xlu0 %v1543_v46 }
 0x3e5   : > { %751 = vmatpush.msra.mxu1 %v1487_v50  ;;  %1339 = vmatmul.msk.f32.vlgmr.msra.gmra.mxu0 %vm526_vm4, %v641_v48 }
 0x3e6   : > { %1341 = vmatmul.msk.f32.vlgmr.msra.gmra.mxu1 %vm526_vm4, %v641_v48  ;;  %1028 = vperm.xlu1 %1409, %v1614_v12  }
 0x3e7   : > { %1020 = vperm.xlu0 %1411, %v1600_v8   ;;  %1410 = vset.pattern.permute.xlu2 %v1543_v46 }
 0x3e8   : > { %1024 = vperm.xlu2 %1410, %v1625_v14   ;;  %v1012_v14 = vld [vmem:[%s1833_s1 + $0x90] sm:$0xff] }
 0x3ed   : > { %1340 = vmatmul.msk.f32.gmra.mxu0 %vm526_vm4, %v642_v51 }
 0x3ee   : > { %1342 = vmatmul.msk.f32.gmra.mxu1 %vm526_vm4, %v642_v51  ;;  %1016 = vperm.xlu1 %1409, %v1595_v7  }
 0x462   : > { %v730_v53 = vpop.f32.mrf.mxu0 }
 0x463   : > { %v753_v54 = vpop.f32.mrf.mxu1  ;;  %v759_v59 = vadd.f32 %v730_v53, %v635_v32  ;;  %v897_v32 = vpop.permute.xlu1 %896 }
 0x464   : > { %v760_v61 = vadd.f32 %v753_v54, %v636_v34  ;;  %v1011_v54 = vld [vmem:[%s1833_s1 + $0x18] sm:$0xff] }
 0x46a   : > { %v733_v55 = vpop.f32.mrf.mxu0 }
 0x46b   : > { %v761_v56 = vadd.f32 %v733_v55, %v637_v29  ;;  %v756_v57 = vpop.f32.mrf.mxu1  ;;  %v888_v29 = vld [vmem:[%s1833_s1 + $0xc8] sm:$0xff] }
 0x46c   : > { %v762_v58 = vadd.f32 %v756_v57, %v638_v31  ;;  %v1013_v55 = vld [vmem:[%s1833_s1 + $0x108] sm:$0xff] }
 0x46d   : > { %795 = vmatpush.msra.mxu2 %v761_v56 }
 0x46e   : > { %818 = vmatpush.msra.mxu3 %v762_v58 }
 0x46f   : > { %796 = vmatpush.msra.mxu2 %v759_v59 }
 0x470   : > { %819 = vmatpush.msra.mxu3 %v760_v61  ;;  %1343 = vmatmul.msk.f32.vlgmr.msra.gmra.mxu2 %vm526_vm4, %v763_v60 }
 0x471   : > { %1345 = vmatmul.msk.f32.vlgmr.msra.gmra.mxu3 %vm526_vm4, %v763_v60 }
 0x478   : > { %1344 = vmatmul.msk.f32.gmra.mxu2 %vm526_vm4, %v764_v62 }
 0x479   : > { %1346 = vmatmul.msk.f32.gmra.mxu3 %vm526_vm4, %v764_v62 }
 0x4f3   : > { %v798_v63 = vpop.f32.mrf.mxu2 }
 0x4f4   : > { %v821_v0 = vpop.f32.mrf.mxu3  ;;  %v799_v6 = vadd.f32 %v798_v63, %v769_v2  ;;  %v1029_v63 = vpop.permute.xlu1 %1028 }
 0x4f5   : > { %v822_v10 = vadd.f32 %v821_v0, %v769_v2  ;;  %v1544_v0 = vmov 4  }
 0x4f6   : > { %1413 = vset.pattern.permute.xlu1 %v1544_v0  ;;  %1412 = vset.pattern.permute.xlu2 %v1544_v0 }
 0x4f7   : > { %1112 = vperm.xlu1 %1413, %v1595_v7   ;;  %1116 = vperm.xlu2 %1412, %v1600_v8  }
 0x4fb   : > { %v801_v3 = vpop.f32.mrf.mxu2 }
 0x4fc   : > { %v802_v4 = vadd.f32 %v801_v3, %v773_v1  ;;  %v824_v5 = vpop.f32.mrf.mxu3 }
 0x4fd   : > { %v825_v9 = vadd.f32 %v824_v5, %v773_v1  ;;  %v1025_v1 = vpop.permute.xlu2 %1024 }
 0x4fe   : > { %1488 = vtanh.f32 %v802_v4 }
 0x4ff   : > { %1490 = vtanh.f32 %v825_v9 }
 0x500   : > { %1492 = vtanh.f32 %v799_v6  ;;  %v1021_v6 = vpop.permute.xlu0 %1020 }
 0x501   : > { %1494 = vtanh.f32 %v822_v10 }
 0x504   : > { %v1489_v11 = vpop.eup %1488 }
 0x505   : > { %v1491_v13 = vpop.eup %1490  ;;  %851 = vmatpush.msrb.mxu0 %v1489_v11 }
 0x506   : > { %v1493_v16 = vpop.eup %1492  ;;  %874 = vmatpush.msrb.mxu1 %v1491_v13  ;;  %v1017_v13 = vpop.permute.xlu1 %1016 }
 0x507   : > { %v1495_v17 = vpop.eup %1494  ;;  %852 = vmatpush.msrb.mxu0 %v1493_v16 }
 0x508   : > { %875 = vmatpush.msrb.mxu1 %v1495_v17  ;;  %1347 = vmatmul.msk.f32.vlgmr.msrb.gmra.mxu0 %vm526_vm4, %v765_v15 }
 0x509   : > { %1349 = vmatmul.msk.f32.vlgmr.msrb.gmra.mxu1 %vm526_vm4, %v765_v15 }
 0x510   : > { %1348 = vmatmul.msk.f32.gmra.mxu0 %vm526_vm4, %v766_v18 }
 0x511   : > { %1350 = vmatmul.msk.f32.gmra.mxu1 %vm526_vm4, %v766_v18 }
 0x585   : > { %v854_v20 = vpop.f32.mrf.mxu0 }
 0x586   : > { %v877_v21 = vpop.f32.mrf.mxu1  ;;  %v883_v26 = vadd.f32 %v854_v20, %v759_v59 }
 0x587   : > { %v884_v28 = vadd.f32 %v877_v21, %v760_v61 }
 0x58d   : > { %v857_v22 = vpop.f32.mrf.mxu0 }
 0x58e   : > { %v885_v23 = vadd.f32 %v857_v22, %v761_v56  ;;  %v880_v24 = vpop.f32.mrf.mxu1  ;;  %v1014_v56 = vld [vmem:[%s1833_s1 + $0x180] sm:$0xff] }
 0x58f   : > { %v886_v25 = vadd.f32 %v880_v24, %v762_v58  ;;  %v1109_v22 = vld [vmem:[%s1833_s1 + $0x20] sm:$0xff] }
 0x590   : > { %919 = vmatpush.msrb.mxu2 %v885_v23 }
 0x591   : > { %942 = vmatpush.msrb.mxu3 %v886_v25 }
 0x592   : > { %920 = vmatpush.msrb.mxu2 %v883_v26 }
 0x593   : > { %943 = vmatpush.msrb.mxu3 %v884_v28  ;;  %1351 = vmatmul.msk.f32.vlgmr.msrb.gmra.mxu2 %vm526_vm4, %v887_v27 }
 0x594   : > { %1353 = vmatmul.msk.f32.vlgmr.msrb.gmra.mxu3 %vm526_vm4, %v887_v27  ;;  %v1545_v27 = vmov 5  }
 0x595   : > { %1414 = vset.pattern.permute.xlu2 %v1545_v27  ;;  %1415 = vset.pattern.permute.xlu0 %v1545_v27 }
 0x59b   : > { %1352 = vmatmul.msk.f32.gmra.mxu2 %vm526_vm4, %v888_v29 }
 0x59c   : > { %1354 = vmatmul.msk.f32.gmra.mxu3 %vm526_vm4, %v888_v29 }
 0x616   : > { %v922_v30 = vpop.f32.mrf.mxu2 }
 0x617   : > { %v945_v31 = vpop.f32.mrf.mxu3  ;;  %v923_v37 = vadd.f32 %v922_v30, %v893_v33  ;;  %v1117_v30 = vpop.permute.xlu2 %1116 }
 0x618   : > { %v946_v39 = vadd.f32 %v945_v31, %v893_v33  ;;  %v1113_v31 = vpop.permute.xlu1 %1112 }
 0x61e   : > { %v925_v34 = vpop.f32.mrf.mxu2 }
 0x61f   : > { %v926_v35 = vadd.f32 %v925_v34, %v897_v32  ;;  %v948_v36 = vpop.f32.mrf.mxu3 }
 0x620   : > { %v949_v38 = vadd.f32 %v948_v36, %v897_v32 }
 0x621   : > { %1496 = vtanh.f32 %v926_v35 }
 0x622   : > { %1498 = vtanh.f32 %v949_v38 }
 0x623   : > { %1500 = vtanh.f32 %v923_v37 }
 0x624   : > { %1502 = vtanh.f32 %v946_v39 }
 0x627   : > { %v1497_v40 = vpop.eup %1496 }
 0x628   : > { %v1499_v41 = vpop.eup %1498  ;;  %975 = vmatpush.msra.mxu0 %v1497_v40  ;;  %v1175_v40 = vld [vmem:[%s1833_s1 + $0x28] sm:$0x7] }
 0x629   : > { %v1501_v43 = vpop.eup %1500  ;;  %998 = vmatpush.msra.mxu1 %v1499_v41 }
 0x62a   : > { %v1503_v44 = vpop.eup %1502  ;;  %976 = vmatpush.msra.mxu0 %v1501_v43 }
 0x62b   : > { %999 = vmatpush.msra.mxu1 %v1503_v44  ;;  %1355 = vmatmul.msk.f32.vlgmr.msra.gmra.mxu0 %vm526_vm4, %v889_v42 }
 0x62c   : > { %1357 = vmatmul.msk.f32.vlgmr.msra.gmra.mxu1 %vm526_vm4, %v889_v42 }
 0x633   : > { %1356 = vmatmul.msk.f32.gmra.mxu0 %vm526_vm4, %v890_v45 }
 0x634   : > { %1358 = vmatmul.msk.f32.gmra.mxu1 %vm526_vm4, %v890_v45 }
 0x6a8   : > { %v978_v47 = vpop.f32.mrf.mxu0 }
 0x6a9   : > { %v1001_v48 = vpop.f32.mrf.mxu1  ;;  %v1007_v53 = vadd.f32 %v978_v47, %v883_v26  ;;  %v1176_v26 = vld [vmem:[%s1833_s1 + $0x30] sm:$0x7] }
 0x6aa   : > { %v1008_v12 = vadd.f32 %v1001_v48, %v884_v28  ;;  %1179 = vperm.xlu2 %1414, %v1176_v26  }
 0x6b0   : > { %v981_v49 = vpop.f32.mrf.mxu0 }
 0x6b1   : > { %v1009_v50 = vadd.f32 %v981_v49, %v885_v23  ;;  %v1004_v51 = vpop.f32.mrf.mxu1 }
 0x6b2   : > { %v1010_v52 = vadd.f32 %v1004_v51, %v886_v25  ;;  %v1110_v25 = vld [vmem:[%s1833_s1 + $0x98] sm:$0xff] }
 0x6b3   : > { %1057 = vmatpush.msra.mxu2 %v1009_v50 }
 0x6b4   : > { %1086 = vmatpush.msra.mxu3 %v1010_v52 }
 0x6b5   : > { %1058 = vmatpush.msra.mxu2 %v1007_v53 }
 0x6b6   : > { %1087 = vmatpush.msra.mxu3 %v1008_v12  ;;  %1359 = vmatmul.msk.f32.vlgmr.msra.gmra.mxu2 %vm526_vm4, %v1011_v54 }
 0x6b7   : > { %1363 = vmatmul.msk.f32.vlgmr.msra.gmra.mxu3 %vm526_vm4, %v1011_v54 }
 0x6be   : > { %1360 = vmatmul.msk.f32.gmra.mxu2 %vm526_vm4, %v1012_v14 }
 0x6bf   : > { %1364 = vmatmul.msk.f32.gmra.mxu3 %vm526_vm4, %v1012_v14 }
 0x6c6   : > { %1361 = vmatmul.msk.f32.gmra.mxu2 %vm526_vm4, %v1013_v55 }
 0x6c7   : > { %1365 = vmatmul.msk.f32.gmra.mxu3 %vm526_vm4, %v1013_v55 }
 0x6ce   : > { %1362 = vmatmul.msk.f32.gmra.mxu2 %vm526_vm4, %v1014_v56 }
 0x6cf   : > { %1366 = vmatmul.msk.f32.gmra.mxu3 %vm526_vm4, %v1014_v56 }
 0x704   : > { %v1180_v43 = vpop.permute.xlu2 %1179 }
 0x739   : > { %v1060_v57 = vpop.f32.mrf.mxu2 }
 0x73a   : > { %v1089_v58 = vpop.f32.mrf.mxu3  ;;  %v1061_v16 = vadd.f32 %v1060_v57, %v1017_v13 }
 0x73b   : > { %v1090_v17 = vadd.f32 %v1089_v58, %v1017_v13 }
 0x741   : > { %v1063_v59 = vpop.f32.mrf.mxu2 }
 0x742   : > { %v1092_v60 = vpop.f32.mrf.mxu3  ;;  %v1064_v11 = vadd.f32 %v1063_v59, %v1021_v6 }
 0x743   : > { %v1093_v15 = vadd.f32 %v1092_v60, %v1021_v6 }
 0x749   : > { %v1066_v61 = vpop.f32.mrf.mxu2 }
 0x74a   : > { %v1095_v62 = vpop.f32.mrf.mxu3  ;;  %v1067_v4 = vadd.f32 %v1066_v61, %v1025_v1 }
 0x74b   : > { %v1096_v10 = vadd.f32 %v1095_v62, %v1025_v1 }
 0x751   : > { %v1069_v2 = vpop.f32.mrf.mxu2 }
 0x752   : > { %v1098_v3 = vpop.f32.mrf.mxu3  ;;  %v1070_v5 = vadd.f32 %v1069_v2, %v1029_v63 }
 0x753   : > { %v1099_v9 = vadd.f32 %v1098_v3, %v1029_v63 }
 0x754   : > { %1504 = vtanh.f32 %v1070_v5 }
 0x755   : > { %1506 = vtanh.f32 %v1099_v9 }
 0x756   : > { %1508 = vtanh.f32 %v1067_v4 }
 0x757   : > { %1510 = vtanh.f32 %v1096_v10 }
 0x758   : > { %1512 = vtanh.f32 %v1064_v11 }
 0x759   : > { %1514 = vtanh.f32 %v1093_v15 }
 0x75a   : > { %v1505_v7 = vpop.eup %1504  ;;  %1516 = vtanh.f32 %v1061_v16 }
 0x75b   : > { %v1507_v8 = vpop.eup %1506  ;;  %1518 = vtanh.f32 %v1090_v17  ;;  %1137 = vmatpush.msrb.mxu0 %v1505_v7 }
 0x75c   : > { %v1509_v18 = vpop.eup %1508  ;;  %1160 = vmatpush.msrb.mxu1 %v1507_v8 }
 0x75d   : > { %v1511_v19 = vpop.eup %1510  ;;  %1138 = vmatpush.msrb.mxu0 %v1509_v18 }
 0x75e   : > { %v1513_v20 = vpop.eup %1512  ;;  %1161 = vmatpush.msrb.mxu1 %v1511_v19 }
 0x75f   : > { %v1515_v21 = vpop.eup %1514  ;;  %1139 = vmatpush.msrb.mxu0 %v1513_v20 }
 0x760   : > { %v1517_v23 = vpop.eup %1516  ;;  %1162 = vmatpush.msrb.mxu1 %v1515_v21 }
 0x761   : > { %v1519_v24 = vpop.eup %1518  ;;  %1140 = vmatpush.msrb.mxu0 %v1517_v23 }
 0x762   : > { %1163 = vmatpush.msrb.mxu1 %v1519_v24  ;;  %1367 = vmatmul.msk.f32.vlgmr.msrb.gmra.mxu0 %vm457_vm3, %v1109_v22 }
 0x763   : > { %1369 = vmatmul.msk.f32.vlgmr.msrb.gmra.mxu1 %vm457_vm3, %v1109_v22 }
 0x76a   : > { %1368 = vmatmul.msk.f32.gmra.mxu0 %vm457_vm3, %v1110_v25 }
 0x76b   : > { %1370 = vmatmul.msk.f32.gmra.mxu1 %vm457_vm3, %v1110_v25 }
 0x7df   : > { %v1142_v28 = vpop.f32.mrf.mxu0 }
 0x7e0   : > { %v1165_v29 = vpop.f32.mrf.mxu1  ;;  %v1143_v34 = vadd.f32 %v1142_v28, %v1113_v31 }
 0x7e1   : > { %v1166_v37 = vadd.f32 %v1165_v29, %v1113_v31 }
 0x7e7   : > { %v1145_v32 = vpop.f32.mrf.mxu0 }
 0x7e8   : > { %v1168_v33 = vpop.f32.mrf.mxu1  ;;  %v1146_v35 = vadd.f32 %v1145_v32, %v1117_v30 }
 0x7e9   : > { %v1169_v36 = vadd.f32 %v1168_v33, %v1117_v30 }
 0x7ea   : > { %1520 = vtanh.f32 %v1146_v35 }
 0x7eb   : > { %1522 = vtanh.f32 %v1169_v36 }
 0x7ec   : > { %1524 = vtanh.f32 %v1143_v34 }
 0x7ed   : > { %1526 = vtanh.f32 %v1166_v37 }
 0x7f0   : > { %v1521_v38 = vpop.eup %1520 }
 0x7f1   : > { %v1523_v39 = vpop.eup %1522  ;;  %1199 = vmatpush.msra.mxu0 %v1521_v38 }
 0x7f2   : > { %v1525_v41 = vpop.eup %1524  ;;  %1219 = vmatpush.msra.mxu1 %v1523_v39 }
 0x7f3   : > { %v1527_v42 = vpop.eup %1526  ;;  %1200 = vmatpush.msra.mxu0 %v1525_v41 }
 0x7f4   : > { %1220 = vmatpush.msra.mxu1 %v1527_v42  ;;  %1371 = vmatmul.msk.f32.vlgmr.msra.gmra.mxu0 %vm526_vm4, %v1175_v40 }
 0x7f5   : > { %1372 = vmatmul.msk.f32.vlgmr.msra.gmra.mxu1 %vm526_vm4, %v1175_v40 }
 0x871   : > { %v1202_v45 = vpop.f32.mrf.mxu0 }
 0x872   : > { %v1222_v44 = vpop.f32.mrf.mxu1  ;;  %v1203_v48 = vadd.f32 %v1202_v45, %v1180_v43 }
 0x873   : > { %v1223_v46 = vadd.f32 %v1222_v44, %v1180_v43 }
 0x875   : > { %v1227_v47 = vrot.slane %v1223_v46, 4 }
 0x877   : > { %v1229_v49 = vsel %vm1228_vm5, %v1203_v48, %v1227_v47 }
 0x878   : > { %1231 = vst [vmem:[%s145_s7] sm:$0x77] %v1229_v49 }
 0x879 PF: > { %s12_s9 = sadd.s32 1, %s1534_s9  }
 0x87a   : > { %p9_p4 = scmp.ge.s32.totalorder %s12_s9, 4  }
 0x87c   :  { %11 = sbr.rel (!%p9_p4) target bundleno = 1 (0x1), region = 58 }

</bundles_post_ra>
